<compile_context>
chip_gen: v6e
topology: v6e:2x2x1
jax: 0.10.0
libtpu: 0.0.40
codegen_flags: <defaults>
</compile_context>

<pallas_src>
import functools

import jax
import jax.numpy as jnp
import numpy as np
from jax import lax
from jax.experimental import pallas as pl
from jax.experimental.pallas import tpu as pltpu


def _coord_attn_kernel(x_ref, p_ref, wf_ref, bias_ref, o_ref, *, Nb, C, S, chunk):
    R, HW = x_ref.shape                       # R = Nb * C
    n_chunks = HW // chunk
    hp = lax.Precision.HIGHEST

    # --- both adaptive average pools as ONE MXU matmul (streaming dtype in, f32 out)
    pooled = jnp.dot(x_ref[...], p_ref[...],
                     precision=hp, preferred_element_type=jnp.float32)     # (R, 2S)

    # --- fused 1x1 convs: att = sigmoid([w1|w2] @ [x_h; x_w] + (b1 + b2)) --------
    xh = pooled[:, :S].reshape(Nb, C, S)                                    # mean over W
    xw = pooled[:, S:].reshape(Nb, C, S)                                    # mean over H
    z = jnp.concatenate([xh, xw], axis=1)                                   # (Nb, 2C, S)
    # TODO(synk): for large C, replace the broadcast + batched matmul with a single
    # (C,2C) x (2C, Nb*S) matmul to avoid materialising Nb copies of the weight.
    wf = jnp.broadcast_to(wf_ref[...][None, :, :], (Nb, C, 2 * C))
    pre = jnp.einsum("nok,nks->nos", wf, z,
                     precision=hp, preferred_element_type=jnp.float32)      # (Nb, C, S)
    pre = pre + bias_ref[...][None, :, :]
    att = 1.0 / (1.0 + jnp.exp(-pre))                                       # f32, tiny

    # --- one tiny (R, chunk) attention pattern: h-major/w-minor flattening means
    # broadcasting over H == repeating the S-vector (chunk // S) times along lanes.
    pattern = jnp.tile(att.reshape(R, S), (1, chunk // S))                  # f32, small

    # --- apply chunk-by-chunk straight from x_ref to o_ref: no full-block temp,
    # per-chunk f32 math (safe on v5e's f32-only VPU), cast only at the store.
    for k in range(n_chunks):
        sl = pl.ds(k * chunk, chunk)
        o_ref[:, sl] = (x_ref[:, sl] * pattern).astype(o_ref.dtype)


def _pick_block_n(N, C, per_batch_bytes, target_bytes=4 << 20):
    """Batch elements per grid step.

    `target_bytes` is the budget for ONE x block; the real per-step VMEM is ~4x
    (double-buffered input + output), which the wrapper reflects in
    vmem_limit_bytes.
    """
    if N * per_batch_bytes <= target_bytes:
        return N                                            # tiny input: 1 grid step
    ok = [d for d in range(1, N + 1)
          if N % d == 0 and d * per_batch_bytes <= target_bytes and (d * C) % 8 == 0]
    if not ok:
        legal = [d for d in range(1, N + 1)
                 if N % d == 0 and ((d * C) % 8 == 0 or d == N)]
        return min(legal)
    best = max(ok)
    # Prefer an even grid-step count (v7x: 2 TensorCores) if it costs < 2x block size.
    even = [d for d in ok if (N // d) % 2 == 0]
    if even and 2 * max(even) >= best:
        return max(even)
    return best


def coordinate_attention(x, w1, b1, w2, b2, *, block_n=None):
    """x: (N, C, H, W); w1, w2: (C, C); b1, b2: (C,) or (C, 1). Returns (N, C, H, W)."""
    N, C, H, W = x.shape
    assert H == W, "CoordinateAttention forward requires H == W (x_h + x_w)"
    assert w1.shape == (C, C) and w2.shape == (C, C)
    S, HW = W, H * W
    dt = x.dtype

    # Lane-dense 2-D layout (free row-major reshape).
    x2 = x.reshape(N * C, HW)

    # Fused 1x1-conv weight and pre-summed bias (tiny -> f32 on every generation).
    wf = jnp.concatenate([w1, w2], axis=1).astype(jnp.float32)              # (C, 2C)
    bias = (jnp.reshape(b1, (C,)) + jnp.reshape(b2, (C,)))
    bias = bias.reshape(C, 1).astype(jnp.float32)                           # (C, 1)

    # Pooling matrix in the streaming dtype: cols [0:S] average over W (-> x_h),
    # cols [S:2S] average over H (-> x_w).
    # NOTE: dense one-hot pooling is the right trade while S <= ~32; revisit if the
    # spatial size grows (MXU cost 2S MAC/elem, footprint HW*2S, double-buffered).
    lin = np.arange(HW)
    pool_np = np.zeros((HW, 2 * S), np.float32)
    pool_np[lin, lin // W] = 1.0 / W
    pool_np[lin, S + lin % W] = 1.0 / H
    pool = jnp.asarray(pool_np, dtype=dt)                                   # (HW, 2S)

    per_batch_bytes = C * HW * dt.itemsize
    if block_n is None:
        block_n = _pick_block_n(N, C, per_batch_bytes)
    assert N % block_n == 0
    rows = block_n * C
    assert rows % 8 == 0 or rows == N * C, "block rows must be sublane-aligned"

    # Apply attention in 128-lane chunks when the flattened spatial axis allows it.
    if HW % 128 == 0 and 128 % W == 0:
        chunk = 128
    else:
        # TODO(synk): generic W — chunk by lcm(W, 128) when it divides H*W.
        chunk = HW

    # VMEM: 2x in block + 2x out block (double buffering) + pooling matrix + slack.
    block_bytes = rows * HW * dt.itemsize
    pool_bytes = HW * 2 * S * dt.itemsize
    vmem_limit = 4 * block_bytes + 2 * pool_bytes + (8 << 20)
    vmem_limit = int(min(max(vmem_limit, 32 << 20), 48 << 20))

    cost = pl.CostEstimate(
        flops=2 * N * C * HW * 2 * S + 2 * N * C * 2 * C * S + N * C * HW,
        transcendentals=N * C * S,
        bytes_accessed=2 * N * C * HW * dt.itemsize + pool.size * dt.itemsize,
    )

    kernel = functools.partial(_coord_attn_kernel, Nb=block_n, C=C, S=S, chunk=chunk)

    out2 = pl.pallas_call(
        kernel,
        out_shape=jax.ShapeDtypeStruct((N * C, HW), dt),
        grid_spec=pltpu.PrefetchScalarGridSpec(
            num_scalar_prefetch=0,
            grid=(N // block_n,),
            in_specs=[
                pl.BlockSpec((rows, HW), lambda i: (i, 0)),        # x block
                pl.BlockSpec((HW, 2 * S), lambda i: (0, 0)),       # pooling matrix
                pl.BlockSpec((C, 2 * C), lambda i: (0, 0)),        # fused conv weight
                pl.BlockSpec((C, 1), lambda i: (0, 0)),            # fused bias
            ],
            out_specs=pl.BlockSpec((rows, HW), lambda i: (i, 0)),
        ),
        compiler_params=pltpu.CompilerParams(
            dimension_semantics=("parallel",),
            vmem_limit_bytes=vmem_limit,
        ),
        cost_estimate=cost,
    )(x2, pool, wf, bias)

    return out2.reshape(N, C, H, W)


def coordinate_attention_ref(x, w1, b1, w2, b2):
    """Pure-JAX reference mirroring the PyTorch forward exactly."""
    hp = lax.Precision.HIGHEST
    xh = jnp.mean(x, axis=3)                                   # (N, C, H)
    xw = jnp.mean(x, axis=2)                                   # (N, C, W)
    a = jnp.einsum("oc,nch->noh", w1, xh, precision=hp) + b1.reshape(1, -1, 1)
    b = jnp.einsum("oc,ncw->now", w2, xw, precision=hp) + b2.reshape(1, -1, 1)
    att = jax.nn.sigmoid(a + b)                                # (N, C, S)
    return x * att[:, :, None, :]


if __name__ == "__main__":
    # Small shapes consistent with the module: N=2, C=in_ch=out_ch=8, H=W=16.
    N, C, H, W = 2, 8, 16, 16

    key = jax.random.PRNGKey(0)
    kx, kw1, kb1, kw2, kb2 = jax.random.split(key, 5)

    x = jax.random.normal(kx, (N, C, H, W), dtype=jnp.float32)

    # Deterministic parameter init (roughly PyTorch Conv2d default scale 1/sqrt(fan_in)).
    bound = 1.0 / np.sqrt(C)
    w1 = jax.random.uniform(kw1, (C, C), jnp.float32, -bound, bound)
    b1 = jax.random.uniform(kb1, (C,), jnp.float32, -bound, bound)
    w2 = jax.random.uniform(kw2, (C, C), jnp.float32, -bound, bound)
    b2 = jax.random.uniform(kb2, (C,), jnp.float32, -bound, bound)

    out = coordinate_attention(x, w1, b1, w2, b2)
    out = jax.block_until_ready(out)

    ref = coordinate_attention_ref(x, w1, b1, w2, b2)
    np.testing.assert_allclose(np.asarray(out), np.asarray(ref), rtol=1e-5, atol=1e-5)

    print("KERNEL_OK")
</pallas_src>

<mosaic_0001>
module attributes {stable_mosaic.version = 11 : i64} {
  func.func @_coord_attn_kernel(%arg0: i32, %arg1: memref<16x256xf32, #tpu.memory_space<vmem>>, %arg2: memref<256x32xf32, #tpu.memory_space<vmem>>, %arg3: memref<8x16xf32, #tpu.memory_space<vmem>>, %arg4: memref<8x1xf32, #tpu.memory_space<vmem>>, %arg5: memref<16x256xf32, #tpu.memory_space<vmem>>) attributes {dimension_semantics = [#tpu.dimension_semantics<parallel>], iteration_bounds = array<i64: 1>, scalar_prefetch = 0 : i64, scratch_operands = 0 : i64, tpu.core_type = #tpu.core_type<tc>, window_params = [{transform_indices = @transform_0, window_bounds = array<i64: 16, 256>}, {pipeline_mode = #tpu.pipeline_mode<synchronous>, transform_indices = @transform_1, window_bounds = array<i64: 256, 32>}, {pipeline_mode = #tpu.pipeline_mode<synchronous>, transform_indices = @transform_2, window_bounds = array<i64: 8, 16>}, {pipeline_mode = #tpu.pipeline_mode<synchronous>, transform_indices = @transform_3, window_bounds = array<i64: 8, 1>}, {transform_indices = @transform_4, window_bounds = array<i64: 16, 256>}]} {
    %c0 = arith.constant 0 : index
    %c0_0 = arith.constant 0 : index
    %0 = vector.load %arg1[%c0, %c0_0] : memref<16x256xf32, #tpu.memory_space<vmem>>, vector<16x256xf32>
    %c0_1 = arith.constant 0 : index
    %c0_2 = arith.constant 0 : index
    %1 = vector.load %arg2[%c0_1, %c0_2] : memref<256x32xf32, #tpu.memory_space<vmem>>, vector<256x32xf32>
    %cst = arith.constant dense<0.000000e+00> : vector<16x32xf32>
    %2 = tpu.matmul %0, %1, %cst {dimension_numbers = #tpu.dot_dimension_numbers<[1], [0], [0], [1], [0, 0, 1, 1], [], []>, precision = #tpu.contract_precision<fp32>} : vector<16x256xf32>, vector<256x32xf32>, vector<16x32xf32> -> vector<16x32xf32>
    %3 = vector.extract_strided_slice %2 {offsets = [0, 0], sizes = [16, 16], strides = [1, 1]} : vector<16x32xf32> to vector<16x16xf32>
    %4 = vector.shape_cast %3 : vector<16x16xf32> to vector<2x8x16xf32>
    %5 = vector.extract_strided_slice %2 {offsets = [0, 16], sizes = [16, 16], strides = [1, 1]} : vector<16x32xf32> to vector<16x16xf32>
    %6 = vector.shape_cast %5 : vector<16x16xf32> to vector<2x8x16xf32>
    %7 = tpu.concatenate %4, %6 in 1 : vector<2x8x16xf32>, vector<2x8x16xf32> -> vector<2x16x16xf32>
    %c0_3 = arith.constant 0 : index
    %c0_4 = arith.constant 0 : index
    %8 = vector.load %arg3[%c0_3, %c0_4] : memref<8x16xf32, #tpu.memory_space<vmem>>, vector<8x16xf32>
    %9 = vector.shape_cast %8 : vector<8x16xf32> to vector<1x8x16xf32>
    %10 = vector.shape_cast %9 : vector<1x8x16xf32> to vector<1x8x16xf32>
    %11 = vector.broadcast %10 : vector<1x8x16xf32> to vector<2x8x16xf32>
    "tpu.trace_start"() <{level = 10 : i32, message = "nok,nks->nos"}> : () -> ()
    %cst_5 = arith.constant dense<0.000000e+00> : vector<2x8x16xf32>
    %12 = tpu.matmul %11, %7, %cst_5 {dimension_numbers = #tpu.dot_dimension_numbers<[2], [1], [1], [2], [0, 0, 0, 1, 1, 2], [0], [0]>, precision = #tpu.contract_precision<fp32>} : vector<2x8x16xf32>, vector<2x16x16xf32>, vector<2x8x16xf32> -> vector<2x8x16xf32>
    "tpu.trace_stop"() : () -> ()
    %c0_6 = arith.constant 0 : index
    %c0_7 = arith.constant 0 : index
    %13 = vector.load %arg4[%c0_6, %c0_7] : memref<8x1xf32, #tpu.memory_space<vmem>>, vector<8x1xf32>
    %14 = vector.shape_cast %13 : vector<8x1xf32> to vector<1x8x1xf32>
    %15 = vector.broadcast %14 : vector<1x8x1xf32> to vector<2x8x16xf32>
    %16 = arith.addf %12, %15 : vector<2x8x16xf32>
    %cst_8 = arith.constant 0.000000e+00 : f32
    %17 = vector.broadcast %cst_8 : f32 to vector<2x8x16xf32>
    %18 = arith.subf %17, %16 : vector<2x8x16xf32>
    %19 = math.exp %18 : vector<2x8x16xf32>
    %cst_9 = arith.constant 1.000000e+00 : f32
    %20 = vector.broadcast %cst_9 : f32 to vector<2x8x16xf32>
    %21 = arith.addf %20, %19 : vector<2x8x16xf32>
    %cst_10 = arith.constant 1.000000e+00 : f32
    %22 = vector.broadcast %cst_10 : f32 to vector<2x8x16xf32>
    %23 = arith.divf %22, %21 : vector<2x8x16xf32>
    %24 = vector.shape_cast %23 : vector<2x8x16xf32> to vector<16x16xf32>
    %25 = tpu.concatenate %24, %24, %24, %24, %24, %24, %24, %24 in 1 : vector<16x16xf32>, vector<16x16xf32>, vector<16x16xf32>, vector<16x16xf32>, vector<16x16xf32>, vector<16x16xf32>, vector<16x16xf32>, vector<16x16xf32> -> vector<16x128xf32>
    %c0_11 = arith.constant 0 : index
    %c0_12 = arith.constant 0 : index
    %26 = vector.load %arg1[%c0_11, %c0_12] : memref<16x256xf32, #tpu.memory_space<vmem>>, vector<16x128xf32>
    %27 = arith.mulf %26, %25 : vector<16x128xf32>
    %c0_13 = arith.constant 0 : index
    %c0_14 = arith.constant 0 : index
    %28 = vector.load %arg5[%c0_13, %c0_14] : memref<16x256xf32, #tpu.memory_space<vmem>>, vector<16x128xf32>
    tpu.vector_store %arg5[%c0_13, %c0_14], %27 {strides = array<i32>} : memref<16x256xf32, #tpu.memory_space<vmem>>, vector<16x128xf32>,
    %c0_15 = arith.constant 0 : index
    %c128 = arith.constant 128 : index
    %29 = vector.load %arg1[%c0_15, %c128] : memref<16x256xf32, #tpu.memory_space<vmem>>, vector<16x128xf32>
    %30 = arith.mulf %29, %25 : vector<16x128xf32>
    %c0_16 = arith.constant 0 : index
    %c128_17 = arith.constant 128 : index
    %31 = vector.load %arg5[%c0_16, %c128_17] : memref<16x256xf32, #tpu.memory_space<vmem>>, vector<16x128xf32>
    tpu.vector_store %arg5[%c0_16, %c128_17], %30 {strides = array<i32>} : memref<16x256xf32, #tpu.memory_space<vmem>>, vector<16x128xf32>,
    return
  }
  func.func @transform_0(%arg0: i32) -> (i32, i32) {
    %c0_i32 = arith.constant 0 : i32
    %c0_i32_0 = arith.constant 0 : i32
    return %arg0, %c0_i32 : i32, i32
  }
  func.func @transform_1(%arg0: i32) -> (i32, i32) {
    %c0_i32 = arith.constant 0 : i32
    %c0_i32_0 = arith.constant 0 : i32
    %c0_i32_1 = arith.constant 0 : i32
    return %c0_i32, %c0_i32_0 : i32, i32
  }
  func.func @transform_2(%arg0: i32) -> (i32, i32) {
    %c0_i32 = arith.constant 0 : i32
    %c0_i32_0 = arith.constant 0 : i32
    %c0_i32_1 = arith.constant 0 : i32
    return %c0_i32, %c0_i32_0 : i32, i32
  }
  func.func @transform_3(%arg0: i32) -> (i32, i32) {
    %c0_i32 = arith.constant 0 : i32
    %c0_i32_0 = arith.constant 0 : i32
    %c0_i32_1 = arith.constant 0 : i32
    return %c0_i32, %c0_i32_0 : i32, i32
  }
  func.func @transform_4(%arg0: i32) -> (i32, i32) {
    %c0_i32 = arith.constant 0 : i32
    %c0_i32_0 = arith.constant 0 : i32
    return %arg0, %c0_i32 : i32, i32
  }
}

</mosaic_0001>

<bundles_post_ra>
// kernel: tpu_custom_call.1
= control target key start
LH: loop header
LB: loop body
LE: loop exit
PB: predicated region body
PF: predicated region fallthrough
CT: control target
= control target key end

     0   :  { %s3307_s0 = inlined_call_operand.vmem [shape: f32[16,256], index: 0, kind: input, shape index: {}]   ;;  %s3308_s1 = inlined_call_operand.vmem [shape: f32[256,32], index: 1, kind: input, shape index: {}]   ;;  %s3309_s2 = inlined_call_operand.vmem [shape: f32[8,16], index: 2, kind: input, shape index: {}]   ;;  %s3310_s3 = inlined_call_operand.vmem [shape: f32[8,1], index: 3, kind: input, shape index: {}]   ;;  %s3311_s4 = inlined_call_operand.hbm [shape: f32[16,256], index: 4, kind: output, shape index: {}]  }
   0x1   :  { %v53_v0 = vld [vmem:[%s3308_s1 + $0xf8] sm:$0xff]  ;;  %v52_v2 = vld [vmem:[%s3308_s1 + $0xf0] sm:$0xff]  ;;  %v51_v7 = vld [vmem:[%s3308_s1 + $0xe8] sm:$0xff] }
   0x2   :  { %v37_v1 = vld [vmem:[%s3308_s1 + $0x78] sm:$0xff]  ;;  %v2451_v3 = vand.u32 4294901760, %v53_v0  ;;  %v2455_v5 = vand.u32 4294901760, %v52_v2  ;;  %v36_v6 = vld [vmem:[%s3308_s1 + $0x70] sm:$0xff]  ;;  %v35_v8 = vld [vmem:[%s3308_s1 + $0x68] sm:$0xff]  ;;  %v2468_v10 = vand.u32 4294901760, %v51_v7 }
   0x3   :  { %v2453_v4 = vand.u32 4294901760, %v37_v1  ;;  %v2466_v9 = vand.u32 4294901760, %v36_v6  ;;  %v2470_v11 = vand.u32 4294901760, %v35_v8  ;;  %v50_v12 = vld [vmem:[%s3308_s1 + $0xe0] sm:$0xff]  ;;  %v49_v14 = vld [vmem:[%s3308_s1 + $0xd8] sm:$0xff]  ;;  %v2499_v20 = vld [vmem:[%s3308_s1 + $0xd0] sm:$0xff] }
   0x4   :  { %v34_v13 = vld [vmem:[%s3308_s1 + $0x60] sm:$0xff]  ;;  %2013 = vmatprep.subr.mxu0 %v2451_v3  ;;  %v2482_v15 = vand.u32 4294901760, %v50_v12  ;;  %v2486_v17 = vand.u32 4294901760, %v49_v14  ;;  %v2489_v18 = vsub.f32 %v53_v0, %v2451_v3  ;;  %v2494_v19 = vld [vmem:[%s3308_s1 + $0x58] sm:$0xff]  ;;  %v2504_v21 = vld [vmem:[%s3308_s1 + $0x50] sm:$0xff]  ;;  %v2514_v24 = vand.u32 4294901760, %v2499_v20 }
   0x5   :  { %v2484_v16 = vand.u32 4294901760, %v34_v13  ;;  %2014 = vmatpush3.msra.mxu0 %v2453_v4  ;;  %v2508_v22 = vand.u32 4294901760, %v2494_v19  ;;  %v2511_v23 = vsub.f32 %v37_v1, %v2453_v4  ;;  %v2517_v25 = vsub.f32 %v52_v2, %v2455_v5  ;;  %v2522_v26 = vld [vmem:[%s3308_s1 + $0xc8] sm:$0xff]  ;;  %v2532_v28 = vld [vmem:[%s3308_s1 + $0xc0] sm:$0xff]  ;;  %v2584_v46 = vld [vmem:[%s3308_s1 + $0xb8] sm:$0xff] }
   0x6   :  { %v2527_v27 = vld [vmem:[%s3308_s1 + $0x48] sm:$0xff]  ;;  %2015 = vmatprep.subr.mxu0 %v2455_v5  ;;  %v3325_v29 = vand.u32 4294901760, %v2489_v18  ;;  %v2537_v30 = vand.u32 4294901760, %v2504_v21  ;;  %v2540_v31 = vsub.f32 %v36_v6, %v2466_v9  ;;  %v2543_v32 = vand.u32 4294901760, %v2522_v26  ;;  %v2557_v37 = vld [vmem:[%s3308_s1 + $0x40] sm:$0xff]  ;;  %v2597_v51 = vld [vmem:[%s3308_s1 + $0x38] sm:$0xff] }
   0x7   :  { %2016 = vmatpush3.msra.mxu0 %v2466_v9  ;;  %v3324_v33 = vand.u32 4294901760, %v2511_v23  ;;  %v3322_v34 = vand.u32 4294901760, %v2517_v25  ;;  %v2549_v35 = vsub.f32 %v51_v7, %v2468_v10  ;;  %v2552_v36 = vand.u32 4294901760, %v2527_v27  ;;  %v2607_v56 = vld [vmem:[%s3308_s1 + $0xb0] sm:$0xff]  ;;  %v2637_v2 = vld [vmem:[%s3308_s1 + $0xa8] sm:$0xff] }
   0x8   :  { %3390 = vst [vmem:[#allocation5_spill] sm:$0xff] %v2537_v30  ;;  %3391 = vst [vmem:[#allocation6_spill] sm:$0xff] %v2543_v32  ;;  %2017 = vmatprep.subr.mxu0 %v2468_v10  ;;  %v297_v38 = vsub.f32 %v2489_v18, %v3325_v29  ;;  %v3321_v39 = vand.u32 4294901760, %v2540_v31  ;;  %v2565_v40 = vsub.f32 %v35_v8, %v2470_v11  ;;  %v2568_v41 = vand.u32 4294901760, %v2532_v28  ;;  %v2622_v61 = vld [vmem:[%s3308_s1 + $0x30] sm:$0xff] }
   0x9   :  { %3392 = vst [vmem:[#allocation7_spill] sm:$0xff] %v2552_v36  ;;  %2018 = vmatpush3.msra.mxu0 %v2470_v11  ;;  %v185_v42 = vsub.f32 %v2511_v23, %v3324_v33  ;;  %v304_v43 = vsub.f32 %v2517_v25, %v3322_v34  ;;  %v3319_v44 = vand.u32 4294901760, %v2549_v35  ;;  %v2579_v45 = vsub.f32 %v50_v12, %v2482_v15 }
   0xa   :  { %3393 = vst [vmem:[#allocation8_spill] sm:$0xff] %v2568_v41  ;;  %2019 = vmatprep.subr.mxu0 %v2482_v15  ;;  %v298_v47 = vand.u32 4294901760, %v297_v38  ;;  %v192_v48 = vsub.f32 %v2540_v31, %v3321_v39  ;;  %v3317_v49 = vand.u32 4294901760, %v2565_v40  ;;  %v2592_v50 = vand.u32 4294901760, %v2557_v37 }
   0xb   :  { %2020 = vmatpush3.msra.mxu0 %v2484_v16  ;;  %v186_v52 = vand.u32 4294901760, %v185_v42  ;;  %v305_v53 = vand.u32 4294901760, %v304_v43  ;;  %v311_v54 = vsub.f32 %v2549_v35, %v3319_v44  ;;  %v3316_v55 = vand.u32 4294901760, %v2579_v45 }
   0xc   :  { %3394 = vst [vmem:[#allocation9_spill] sm:$0xff] %v2592_v50  ;;  %2021 = vmatprep.subr.mxu0 %v2486_v17  ;;  %2051 = vmatprep.subr.mxu1 %v298_v47  ;;  %v193_v57 = vand.u32 4294901760, %v192_v48  ;;  %v199_v58 = vsub.f32 %v2565_v40, %v3317_v49  ;;  %v2614_v59 = vsub.f32 %v34_v13, %v2484_v16  ;;  %v2617_v60 = vand.u32 4294901760, %v2584_v46 }
   0xd   :  { %2022 = vmatpush3.msra.mxu0 %v2508_v22  ;;  %2052 = vmatpush3.msra.mxu1 %v186_v52  ;;  %v312_v62 = vand.u32 4294901760, %v311_v54  ;;  %v318_v63 = vsub.f32 %v2579_v45, %v3316_v55  ;;  %v2629_v0 = vsub.f32 %v49_v14, %v2486_v17  ;;  %v2632_v1 = vand.u32 4294901760, %v2597_v51 }
   0xe   :  { %3395 = vst [vmem:[#allocation10_spill] sm:$0xff] %v2617_v60 }
   0xf   :  { %3396 = vst [vmem:[#allocation11_spill] sm:$0xff] %v2632_v1 }
  0x10   :  { %9 = vsyncpa [#allocation3], 0  ;;  %2023 = vmatprep.subr.mxu0 %v2514_v24  ;;  %2053 = vmatprep.subr.mxu1 %v305_v53  ;;  %v200_v6 = vand.u32 4294901760, %v199_v58  ;;  %v3314_v7 = vand.u32 4294901760, %v2614_v59  ;;  %v2643_v8 = vsub.f32 %v2494_v19, %v2508_v22  ;;  %v2646_v12 = vand.u32 4294901760, %v2607_v56  ;;  %v2651_v13 = vld [vmem:[%s3308_s1 + $0x28] sm:$0xff] }
  0x11   :  { %2024 = vmatpush3.msra.mxu0 %v2537_v30  ;;  %2054 = vmatpush3.msra.mxu1 %v193_v57  ;;  %v319_v14 = vand.u32 4294901760, %v318_v63  ;;  %v3312_v38 = vand.u32 4294901760, %v2629_v0  ;;  %v2657_v42 = vsub.f32 %v2499_v20, %v2514_v24  ;;  %v2660_v19 = vand.u32 4294901760, %v2622_v61  ;;  %v2677_v20 = vld [vmem:[%s3308_s1 + $0xa0] sm:$0xff]  ;;  %v2730_v49 = vld [vmem:[%s3308_s1 + $0x18] sm:$0xff]  ;;  %v2746_v44 = vld [vmem:[%s3308_s1 + $0x90] sm:$0xff] }
  0x12   :  { %3397 = vst [vmem:[#allocation12_spill] sm:$0xff] %v2646_v12  ;;  %2025 = vmatprep.subr.mxu0 %v2543_v32  ;;  %2055 = vmatprep.subr.mxu1 %v312_v62  ;;  %v206_v43 = vsub.f32 %v2614_v59, %v3314_v7  ;;  %v3313_v47 = vand.u32 4294901760, %v2643_v8  ;;  %v2669_v48 = vsub.f32 %v2504_v21, %v2537_v30  ;;  %v2672_v52 = vand.u32 4294901760, %v2637_v2  ;;  %v2773_v33 = vld [vmem:[%s3308_s1 + $0x88] sm:$0xff]  ;;  %s2411_s12 = smov 48   ;;  %s2412_s13 = smov 64  }
  0x13   :  { %3398 = vst [vmem:[#allocation13_spill] sm:$0xff] %v2660_v19  ;;  %2026 = vmatpush3.msra.mxu0 %v2552_v36  ;;  %2056 = vmatpush3.msra.mxu1 %v200_v6  ;;  %v325_v53 = vsub.f32 %v2629_v0, %v3312_v38  ;;  %v3315_v54 = vand.u32 4294901760, %v2657_v42  ;;  %v2686_v21 = vsub.f32 %v2522_v26, %v2543_v32  ;;  %v2689_v57 = vand.u32 4294901760, %v2651_v13  ;;  %v2703_v26 = vld [vmem:[%s3308_s1 + $0x20] sm:$0xff]  ;;  %s2413_s14 = smov 80   ;;  %s2414_s15 = smov 96  }
  0x14   :  { %3399 = vst [vmem:[#allocation14_spill] sm:$0xff] %v2672_v52  ;;  %2027 = vmatprep.subr.mxu0 %v2568_v41  ;;  %2057 = vmatprep.subr.mxu1 %v319_v14  ;;  %v207_v58 = vand.u32 4294901760, %v206_v43  ;;  %v213_v62 = vsub.f32 %v2643_v8, %v3313_v47  ;;  %v3318_v63 = vand.u32 4294901760, %v2669_v48  ;;  %v2698_v6 = vsub.f32 %v2527_v27, %v2552_v36  ;;  %v2716_v27 = vld [vmem:[%s3308_s1 + $0x98] sm:$0xff]  ;;  %s2415_s16 = smov [#allocation2]  }
  0x15   :  { %3400 = vst [vmem:[#allocation15_spill] sm:$0xff] %v2689_v57  ;;  %2028 = vmatpush3.msra.mxu0 %v2592_v50  ;;  %v326_v38 = vand.u32 4294901760, %v325_v53  ;;  %v332_v14 = vsub.f32 %v2657_v42, %v3315_v54  ;;  %v3320_v43 = vand.u32 4294901760, %v2686_v21  ;;  %v2711_v47 = vand.u32 4294901760, %v2677_v20  ;;  %s2002_s17 = sshll.u32 %s2415_s16, 4  ;;  %s2003_s17 = int_to_ptr.vmem [resolvable:$true] %s2002_s17 }
  0x16   :  { %2058 = vmatpush3.msra.mxu1 %v207_v58  ;;  %2029 = vmatprep.subr.mxu0 %v2617_v60  ;;  %v214_v7 = vand.u32 4294901760, %v213_v62  ;;  %v220_v53 = vsub.f32 %v2669_v48, %v3318_v63  ;;  %v3323_v54 = vand.u32 4294901760, %v2698_v6  ;;  %v2725_v55 = vsub.f32 %v2532_v28, %v2568_v41  ;;  %v2868_v41 = vld [vmem:[%s3307_s0] sm:$0xff]  ;;  %s2383_s18 = scalar_lea.vmem %s2003_s17, 512  ;;  %p2388_p1 = scmp.lt.s32.totalorder %s2003_s17, %s2003_s17 }
  0x17   :  { %3401 = vst [vmem:[#allocation16_spill] sm:$0xff] %v2711_v47  ;;  %2059 = vmatprep.subr.mxu1 %v326_v38  ;;  %2030 = vmatpush3.msra.mxu0 %v2632_v1  ;;  %v333_v58 = vand.u32 4294901760, %v332_v14  ;;  %v339_v62 = vsub.f32 %v2686_v21, %v3320_v43  ;;  %v2737_v63 = vand.u32 4294901760, %v2703_v26  ;;  %v2741_v28 = vsub.f32 %v2557_v37, %v2592_v50  ;;  %v2759_v37 = vld [vmem:[%s3308_s1 + $0x10] sm:$0xff]  ;;  %p2384_p0 = scmp.ne.s32.totalorder %s2003_s17, %s2383_s18  ;;  %p2389_p2 = scmp.lt.s32.totalorder %s2383_s18, %s2383_s18 }
  0x18   :  { %2060 = vmatpush3.msra.mxu1 %v214_v7  ;;  %2031 = vmatprep.subr.mxu0 %v2646_v12  ;;  %v221_v38 = vand.u32 4294901760, %v220_v53  ;;  %v227_v14 = vsub.f32 %v2698_v6, %v3323_v54  ;;  %v3328_v43 = vand.u32 4294901760, %v2725_v55  ;;  %v2754_v39 = vand.u32 4294901760, %v2716_v27  ;;  %3414 = vst [vmem:[#allocation26_spill] sm:$0xff] %v2868_v41 }
  0x19   :  { %3402 = vst [vmem:[#allocation17_spill] sm:$0xff] %v2737_v63  ;;  %2061 = vmatprep.subr.mxu1 %v333_v58  ;;  %2032 = vmatpush3.msra.mxu0 %v2660_v19  ;;  %v340_v7 = vand.u32 4294901760, %v339_v62  ;;  %v3329_v53 = vand.u32 4294901760, %v2741_v28  ;;  %v2765_v34 = vsub.f32 %v2584_v46, %v2617_v60  ;;  %v2768_v54 = vand.u32 4294901760, %v2730_v49  ;;  %p2390_p3 = por %p2389_p2, %p2388_p1 }
  0x1a   :  { %3403 = vst [vmem:[#allocation18_spill] sm:$0xff] %v2754_v39  ;;  %2062 = vmatpush3.msra.mxu1 %v221_v38  ;;  %2033 = vmatprep.subr.mxu0 %v2672_v52  ;;  %v228_v58 = vand.u32 4294901760, %v227_v14  ;;  %v346_v62 = vsub.f32 %v2725_v55, %v3328_v43  ;;  %v2781_v46 = vsub.f32 %v2597_v51, %v2632_v1  ;;  %v2784_v29 = vand.u32 4294901760, %v2746_v44  ;;  %v2801_v51 = vld [vmem:[%s3308_s1 + $0x8] sm:$0xff] }
  0x1b   :  { %3404 = vst [vmem:[#allocation19_spill] sm:$0xff] %v2768_v54  ;;  %2063 = vmatprep.subr.mxu1 %v340_v7  ;;  %2034 = vmatpush3.msra.mxu0 %v2689_v57  ;;  %v234_v38 = vsub.f32 %v2741_v28, %v3329_v53  ;;  %v2793_v60 = vsub.f32 %v2607_v56, %v2646_v12  ;;  %v2796_v43 = vand.u32 4294901760, %v2759_v37  ;;  %v2810_v56 = vand.u32 4294901760, %v2773_v33  ;;  %v2815_v12 = vld [vmem:[%s3308_s1 + $0x80] sm:$0xff]  ;;  %p2391_p4 = pnand %p2390_p3, %p2384_p0 }
  0x1c   :  { %3405 = vst [vmem:[#allocation20_spill] sm:$0xff] %v2784_v29  ;;  %2064 = vmatpush3.msra.mxu1 %v228_v58  ;;  %2035 = vmatprep.subr.mxu0 %v2711_v47  ;;  %v347_v7 = vand.u32 4294901760, %v346_v62  ;;  %v2807_v14 = vsub.f32 %v2622_v61, %v2660_v19  ;;  %v3409_v1 = vand.u32 4294901760, %v2765_v34  ;;  %v2824_v61 = vsub.f32 %v2637_v2, %v2672_v52  ;;  %v2841_v2 = vld [vmem:[%s3308_s1] sm:$0xff] }
  0x1d   :  { %3406 = vst [vmem:[#allocation21_spill] sm:$0xff] %v2796_v43  ;;  %3408 = vst [vmem:[#allocation23_spill] sm:$0xff] %v2810_v56  ;;  %2036 = vmatpush3.msra.mxu0 %v2737_v63  ;;  %v235_v58 = vand.u32 4294901760, %v234_v38  ;;  %v3346_v53 = vand.u32 4294901760, %v2793_v60  ;;  %v3410_v19 = vand.u32 4294901760, %v2781_v46  ;;  %v2832_v38 = vand.u32 4294901760, %v2801_v51 }
  0x1e   :  { %3407 = vst [vmem:[#allocation22_spill] sm:$0xff] %v2807_v14  ;;  %v353_v62 = vsub.f32 %v2765_v34, %v3409_v1  ;;  %2065 = vmatprep.subr.mxu1 %v347_v7  ;;  %2037 = vmatprep.subr.mxu0 %v2754_v39  ;;  %v2836_v1 = vsub.f32 %v2651_v13, %v2689_v57  ;;  %v2849_v52 = vand.u32 4294901760, %v2815_v12  ;;  %v2854_v13 = vld [vmem:[%s3307_s0 + $0x8] sm:$0xff]  ;;  %vm2406_vm0 = vmmov 0  }
  0x1f   :  { %v241_v50 = vsub.f32 %v2781_v46, %v3410_v19  ;;  %2066 = vmatpush3.msra.mxu1 %v235_v58  ;;  %2038 = vmatpush3.msra.mxu0 %v2768_v54  ;;  %v360_v19 = vsub.f32 %v2793_v60, %v3346_v53  ;;  %3412 = vst [vmem:[#allocation25_spill] sm:$0xff] %v2854_v13  ;;  %v3413_v58 = vand.u32 4294901760, %v2807_v14  ;;  %vm987_vm1 = vcmask 130048  }
  0x20   :  { %3411 = vst [vmem:[#allocation24_spill] sm:$0xff] %v2836_v1  ;;  %v354_v7 = vand.u32 4294901760, %v353_v62  ;;  %2039 = vmatprep.subr.mxu0 %v2784_v29  ;;  %v2863_v53 = vsub.f32 %v2677_v20, %v2711_v47  ;;  %v2879_v20 = vsub.f32 %v2703_v26, %v2737_v63  ;;  %v2908_v26 = vsub.f32 %v2730_v49, %v2768_v54 }
  0x21   :  { %v242_v57 = vand.u32 4294901760, %v241_v50  ;;  %v248_v62 = vsub.f32 %v2807_v14, %v3413_v58  ;;  %v361_v32 = vand.u32 4294901760, %v360_v19  ;;  %2040 = vmatpush3.msra.mxu0 %v2796_v43  ;;  %v3415_v50 = vand.u32 4294901760, %v2824_v61 }
  0x22   :  { %2067 = vmatprep.subr.mxu1 %v354_v7  ;;  %v2875_v58 = vand.u32 4294901760, %v2841_v2  ;;  %3416 = vst [vmem:[#allocation27_spill] sm:$0xff] %v2879_v20  ;;  %2041 = vmatprep.subr.mxu0 %v2810_v56  ;;  %v3417_v7 = vand.u32 4294901760, %v2836_v1  ;;  %v3355_v47 = vand.u32 4294901760, %v2863_v53  ;;  %v2887_v14 = vand.u32 4294901760, %v2854_v13  ;;  %3420 = vst [vmem:[#allocation30_spill] sm:$0xff] %v2908_v26 }
  0x23   :  { %v367_v30 = vsub.f32 %v2824_v61, %v3415_v50  ;;  %2068 = vmatpush3.msra.mxu1 %v242_v57  ;;  %v249_v36 = vand.u32 4294901760, %v248_v62  ;;  %2042 = vmatpush3.msra.mxu0 %v2832_v38  ;;  %v2893_v57 = vsub.f32 %v2716_v27, %v2754_v39  ;;  %v2896_v62 = vand.u32 4294901760, %v2868_v41 }
  0x24   :  { %v255_v19 = vsub.f32 %v2836_v1, %v3417_v7  ;;  %3418 = vst [vmem:[#allocation28_spill] sm:$0xff] %v2887_v14  ;;  %2069 = vmatprep.subr.mxu1 %v361_v32  ;;  %2043 = vmatprep.subr.mxu0 %v2849_v52  ;;  %v374_v32 = vsub.f32 %v2863_v53, %v3355_v47  ;;  %v3367_v54 = vand.u32 4294901760, %v2908_v26  ;;  %vm1967_vm2 = vcmask 261120  }
  0x25   :  { %v368_v50 = vand.u32 4294901760, %v367_v30  ;;  %3419 = vst [vmem:[#allocation29_spill] sm:$0xff] %v2896_v62  ;;  %2070 = vmatpush3.msra.mxu1 %v249_v36  ;;  %v2904_v30 = vsub.f32 %v2854_v13, %v2887_v14  ;;  %2044 = vmatpush3.msra.mxu0 %v2875_v58  ;;  %v3421_v36 = vand.u32 4294901760, %v2879_v20  ;;  %v2917_v47 = vsub.f32 %v2868_v41, %v2896_v62 }
  0x26   :  { %v256_v7 = vand.u32 4294901760, %v255_v19  ;;  %v2921_v13 = vsub.f32 %v2746_v44, %v2784_v29  ;;  %v375_v49 = vand.u32 4294901760, %v374_v32  ;;  %2089 = vmatprep.subr.mxu0 %v2489_v18  ;;  %v3422_v41 = vand.u32 4294901760, %v2893_v57  ;;  %406 = vmatprep.mubr.f32.mxu1 %v2887_v14 }
  0x27   :  { %2071 = vmatprep.subr.mxu1 %v368_v50  ;;  %v262_v27 = vsub.f32 %v2879_v20, %v3421_v36  ;;  %v3364_v50 = vand.u32 4294901760, %v2904_v30  ;;  %v2928_v36 = vsub.f32 %v2759_v37, %v2796_v43  ;;  %v269_v37 = vsub.f32 %v2908_v26, %v3367_v54 }
  0x28   :  { %2072 = vmatpush3.msra.mxu1 %v256_v7  ;;  %v381_v39 = vsub.f32 %v2893_v57, %v3422_v41  ;;  %v2945_v41 = vsub.f32 %v2773_v33, %v2810_v56  ;;  %v3423_v7 = vand.u32 4294901760, %v2917_v47  ;;  %v3424_v14 = vand.u32 4294901760, %v2921_v13 }
  0x29   :  { %v263_v19 = vand.u32 4294901760, %v262_v27  ;;  %2073 = vmatprep.subr.mxu1 %v375_v49  ;;  %v153_v32 = vsub.f32 %v2904_v30, %v3364_v50  ;;  %v2955_v43 = vsub.f32 %v2801_v51, %v2832_v38  ;;  %v270_v27 = vand.u32 4294901760, %v269_v37 }
  0x2a   :  { %v382_v44 = vand.u32 4294901760, %v381_v39  ;;  %v159_v49 = vsub.f32 %v2917_v47, %v3423_v7  ;;  %v388_v50 = vsub.f32 %v2921_v13, %v3424_v14  ;;  %v3425_v29 = vand.u32 4294901760, %v2928_v36 }
  0x2b   :  { %2074 = vmatpush3.msra.mxu1 %v263_v19  ;;  %v154_v54 = vand.u32 4294901760, %v153_v32  ;;  %v3375_v39 = vand.u32 4294901760, %v2945_v41  ;;  %v3374_v7 = vand.u32 4294901760, %v2955_v43  ;;  %v2964_v14 = vsub.f32 %v2815_v12, %v2849_v52 }
  0x2c   :  { %v276_v33 = vsub.f32 %v2928_v36, %v3425_v29  ;;  %2075 = vmatprep.subr.mxu1 %v382_v44  ;;  %v160_v19 = vand.u32 4294901760, %v159_v49  ;;  %v389_v56 = vand.u32 4294901760, %v388_v50  ;;  %v2971_v29 = vsub.f32 %v2841_v2, %v2875_v58  ;;  %v2991_v49 = vld [vmem:[%s3307_s0 + $0x18] sm:$0xff] }
  0x2d   :  { %3426 = vst [vmem:[#allocation31_spill] sm:$0xff] %v2964_v14  ;;  %155 = vmatprep.mubr.f32.mxu0 %v154_v54  ;;  %2076 = vmatpush3.msra.mxu1 %v270_v27  ;;  %v395_v32 = vsub.f32 %v2945_v41, %v3375_v39  ;;  %v283_v50 = vsub.f32 %v2955_v43, %v3374_v7  ;;  %v3373_v12 = vand.u32 4294901760, %v2964_v14  ;;  %3428 = vst [vmem:[#allocation33_spill] sm:$0xff] %v2991_v49  ;;  %v3434_v7 = vld [vmem:[#allocation7_spill] sm:$0xff]  ;;  %v3435_v39 = vld [vmem:[#allocation8_spill] sm:$0xff]  ;;  %vm1970_vm3 = vcmask 392192  }
  0x2e   :  { %v277_v51 = vand.u32 4294901760, %v276_v33  ;;  %3427 = vst [vmem:[#allocation32_spill] sm:$0xff] %v2971_v29  ;;  %161 = vmatmul.mubr.f32.vlgmr.msra.gmra.mxu0 %v160_v19  ;;  %2077 = vmatprep.subr.mxu1 %v389_v56  ;;  %v3372_v44 = vand.u32 4294901760, %v2971_v29  ;;  %v2998_v19 = vld [vmem:[%s3307_s0 + $0x10] sm:$0xff]  ;;  %s2407_s0 = smov 112   ;;  %vm1973_vm4 = vcmask 523264  }
  0x2f   :  { %2090 = vmatpush3.msra.mxu0 %v2511_v23  ;;  %v396_v54 = vand.u32 4294901760, %v395_v32  ;;  %v284_v37 = vand.u32 4294901760, %v283_v50  ;;  %v402_v2 = vsub.f32 %v2964_v14, %v3373_v12  ;;  %3429 = vst [vmem:[#allocation34_spill] sm:$0xff] %v2998_v19  ;;  %v3009_v32 = vand.u32 4294901760, %v2998_v19 }
  0x30   :  { %2078 = vmatpush3.msra.mxu1 %v277_v51  ;;  %2091 = vmatprep.subr.mxu0 %v2517_v25  ;;  %v290_v56 = vsub.f32 %v2971_v29, %v3372_v44  ;;  %v3002_v51 = vand.u32 4294901760, %v2991_v49  ;;  %v3433_v44 = vld [vmem:[#allocation6_spill] sm:$0xff]  ;;  %vm1976_vm5 = vcmask 654336   ;;  %vm1979_vm6 = vcmask 785408  }
  0x31   :  { %2092 = vmatpush3.msra.mxu0 %v2540_v31  ;;  %2079 = vmatprep.subr.mxu1 %v396_v54  ;;  %v403_v27 = vand.u32 4294901760, %v402_v2  ;;  %v3025_v54 = vsub.f32 %v2998_v19, %v3009_v32  ;;  %v3437_v19 = vld [vmem:[#allocation10_spill] sm:$0xff]  ;;  %vm1982_vm7 = vcmask 916480  }
  0x32   :  { %2093 = vmatprep.subr.mxu0 %v2549_v35  ;;  %2080 = vmatpush3.msra.mxu1 %v284_v37  ;;  %v291_v33 = vand.u32 4294901760, %v290_v56  ;;  %3430 = vst [vmem:[#allocation35_spill] sm:$0xff] %v3002_v51  ;;  %v3017_v50 = vsub.f32 %v2991_v49, %v3002_v51  ;;  %v3431_v56 = vld [vmem:[#allocation22_spill] sm:$0xff]  ;;  %v3436_v49 = vld [vmem:[#allocation9_spill] sm:$0xff] }
  0x33   :  { %2094 = vmatpush3.msra.mxu0 %v2565_v40  ;;  %2081 = vmatprep.subr.mxu1 %v403_v27  ;;  %v3382_v2 = vand.u32 4294901760, %v3025_v54 }
  0x34   :  { %2095 = vmatprep.subr.mxu0 %v2579_v45  ;;  %2082 = vmatpush3.msra.mxu1 %v291_v33  ;;  %v3376_v37 = vand.u32 4294901760, %v3017_v50  ;;  %v3432_v33 = vld [vmem:[#allocation5_spill] sm:$0xff] }
  0x35   :  { %2096 = vmatpush3.msra.mxu0 %v2614_v59  ;;  %408 = vmatmul.mubr.f32.vlgmr.msra.gmra.mxu1 %v2896_v62  ;;  %v174_v12 = vsub.f32 %v3025_v54, %v3382_v2  ;;  %v3439_v2 = vld [vmem:[#allocation12_spill] sm:$0xff] }
  0x36   :  { %2097 = vmatprep.subr.mxu0 %v2629_v0  ;;  %2127 = vmatprep.subr.mxu1 %v2451_v3  ;;  %v168_v27 = vsub.f32 %v3017_v50, %v3376_v37 }
  0x37   :  { %2098 = vmatpush3.msra.mxu0 %v2643_v8  ;;  %2128 = vmatpush3.msra.mxu1 %v2453_v4  ;;  %v175_v62 = vand.u32 4294901760, %v174_v12  ;;  %v3443_v12 = vld [vmem:[#allocation16_spill] sm:$0xff] }
  0x38   :  { %2099 = vmatprep.subr.mxu0 %v2657_v42  ;;  %2129 = vmatprep.subr.mxu1 %v2455_v5  ;;  %v169_v37 = vand.u32 4294901760, %v168_v27  ;;  %v3441_v27 = vld [vmem:[#allocation14_spill] sm:$0xff] }
  0x39   :  { %2100 = vmatpush3.msra.mxu0 %v2669_v48  ;;  %2130 = vmatpush3.msra.mxu1 %v2466_v9 }
  0x3a   :  { %2101 = vmatprep.subr.mxu0 %v2686_v21  ;;  %2131 = vmatprep.subr.mxu1 %v2468_v10 }
  0x3b   :  { %2102 = vmatpush3.msra.mxu0 %v2698_v6  ;;  %2132 = vmatpush3.msra.mxu1 %v2470_v11 }
  0x3c   :  { %2103 = vmatprep.subr.mxu0 %v2725_v55  ;;  %2133 = vmatprep.subr.mxu1 %v2482_v15 }
  0x3d   :  { %2104 = vmatpush3.msra.mxu0 %v2741_v28  ;;  %2134 = vmatpush3.msra.mxu1 %v2484_v16 }
  0x3e   :  { %2105 = vmatprep.subr.mxu0 %v2765_v34  ;;  %2135 = vmatprep.subr.mxu1 %v2486_v17 }
  0x3f   :  { %2106 = vmatpush3.msra.mxu0 %v2781_v46  ;;  %2136 = vmatpush3.msra.mxu1 %v2508_v22 }
  0x40   :  { %2107 = vmatprep.subr.mxu0 %v2793_v60  ;;  %2137 = vmatprep.subr.mxu1 %v2514_v24 }
  0x41   :  { %2108 = vmatpush3.msra.mxu0 %v3431_v56  ;;  %2138 = vmatpush3.msra.mxu1 %v3432_v33 }
  0x42   :  { %2109 = vmatprep.subr.mxu0 %v2824_v61  ;;  %2139 = vmatprep.subr.mxu1 %v3433_v44 }
  0x43   :  { %2110 = vmatpush3.msra.mxu0 %v2836_v1  ;;  %2140 = vmatpush3.msra.mxu1 %v3434_v7  ;;  %v3438_v1 = vld [vmem:[#allocation11_spill] sm:$0xff] }
  0x44   :  { %2111 = vmatprep.subr.mxu0 %v2863_v53  ;;  %2141 = vmatprep.subr.mxu1 %v3435_v39 }
  0x45   :  { %2112 = vmatpush3.msra.mxu0 %v2879_v20  ;;  %2142 = vmatpush3.msra.mxu1 %v3436_v49  ;;  %v3440_v20 = vld [vmem:[#allocation13_spill] sm:$0xff] }
  0x46   :  { %2113 = vmatprep.subr.mxu0 %v2893_v57  ;;  %2143 = vmatprep.subr.mxu1 %v3437_v19 }
  0x47   :  { %2114 = vmatpush3.msra.mxu0 %v2908_v26  ;;  %2144 = vmatpush3.msra.mxu1 %v3438_v1  ;;  %v3442_v26 = vld [vmem:[#allocation15_spill] sm:$0xff] }
  0x48   :  { %2115 = vmatprep.subr.mxu0 %v2921_v13  ;;  %2145 = vmatprep.subr.mxu1 %v3439_v2 }
  0x49   :  { %170 = vmatprep.mubr.f32.mxu0 %v169_v37  ;;  %2116 = vmatpush3.msra.mxu0 %v2928_v36  ;;  %v3445_v37 = vand.u32 4294901760, %v2489_v18  ;;  %v3452_v18 = vld [vmem:[#allocation23_spill] sm:$0xff] }
  0x4a   :  { %2146 = vmatpush3.msra.mxu1 %v3440_v20  ;;  %176 = vmatmul.mubr.f32.gmra.mxu0 %v175_v62  ;;  %v3444_v62 = vld [vmem:[#allocation18_spill] sm:$0xff] }
  0x4b   :  { %2117 = vmatprep.subr.mxu0 %v2945_v41  ;;  %2147 = vmatprep.subr.mxu1 %v3441_v27 }
  0x4c   :  { %2118 = vmatpush3.msra.mxu0 %v2955_v43  ;;  %2148 = vmatpush3.msra.mxu1 %v3442_v26 }
  0x4d   :  { %2119 = vmatprep.subr.mxu0 %v2964_v14  ;;  %2149 = vmatprep.subr.mxu1 %v3443_v12  ;;  %v3446_v14 = vand.u32 4294901760, %v2511_v23  ;;  %v3447_v12 = vld [vmem:[#allocation19_spill] sm:$0xff]  ;;  %v3453_v23 = vand.u32 4294901760, %v2549_v35  ;;  %v3458_v35 = vand.u32 4294901760, %v2917_v47 }
  0x4e   :  { %2120 = vmatpush3.msra.mxu0 %v2971_v29  ;;  %550 = vmatprep.mubr.f32.mxu0 %v2904_v30  ;;  %v3448_v29 = vand.u32 4294901760, %v2517_v25  ;;  %v3454_v25 = vand.u32 4294901760, %v2565_v40  ;;  %v3460_v40 = vand.u32 4294901760, %v2643_v8  ;;  %v3469_v8 = vand.u32 4294901760, %v2765_v34 }
  0x4f   :  { %2150 = vmatpush3.msra.mxu1 %v2737_v63  ;;  %413 = vmatprep.mubr.f32.mxu1 %v3002_v51  ;;  %v3449_v63 = vld [vmem:[#allocation20_spill] sm:$0xff]  ;;  %v3450_v51 = vld [vmem:[#allocation21_spill] sm:$0xff] }
  0x50   :  { %553 = vmatmul.mubr.f32.vlgmr.msra.gmra.mxu0 %v2917_v47  ;;  %2151 = vmatprep.subr.mxu1 %v3444_v62  ;;  %v3451_v62 = vand.u32 4294901760, %v2540_v31  ;;  %v3456_v31 = vand.u32 4294901760, %v2904_v30  ;;  %v3463_v47 = vand.u32 4294901760, %v2669_v48  ;;  %v3491_v30 = vld [vmem:[#allocation28_spill] sm:$0xff] }
  0x51   :  { %2165 = vmatprep.subr.mxu0 %v3445_v37  ;;  %415 = vmatmul.mubr.f32.gmra.mxu1 %v3009_v32 }
  0x52   :  { %2166 = vmatpush3.msra.mxu0 %v3446_v14  ;;  %2152 = vmatpush3.msra.mxu1 %v3447_v12  ;;  %v3455_v14 = vand.u32 4294901760, %v2579_v45  ;;  %v3461_v45 = vand.u32 4294901760, %v2657_v42  ;;  %v3480_v42 = vld [vmem:[#allocation30_spill] sm:$0xff] }
  0x53   :  { %2167 = vmatprep.subr.mxu0 %v3448_v29  ;;  %2153 = vmatprep.subr.mxu1 %v3449_v63  ;;  %v3457_v29 = vand.u32 4294901760, %v2614_v59  ;;  %v3462_v59 = vand.u32 4294901760, %v3017_v50  ;;  %v3481_v48 = vand.u32 4294901760, %v3480_v42  ;;  %v2408_v42 = vmov 0  }
  0x54   :  { %559 = vmatprep.mubr.f32.mxu0 %v3017_v50  ;;  %2154 = vmatpush3.msra.mxu1 %v3450_v51 }
  0x55   :  { %2168 = vmatpush3.msra.mxu0 %v3451_v62  ;;  %2155 = vmatprep.subr.mxu1 %v3452_v18  ;;  %v3459_v62 = vand.u32 4294901760, %v2629_v0  ;;  %v3465_v0 = vand.u32 4294901760, %v2686_v21  ;;  %v3482_v21 = vand.u32 4294901760, %v2921_v13  ;;  %v3489_v13 = vld [vmem:[#allocation32_spill] sm:$0xff] }
  0x56   :  { %562 = vmatmul.mubr.f32.gmra.mxu0 %v3025_v54  ;;  %2169 = vmatprep.subr.mxu0 %v3453_v23 }
  0x57   :  { %2156 = vmatpush3.msra.mxu1 %v2832_v38  ;;  %2170 = vmatpush3.msra.mxu0 %v3454_v25  ;;  %v2405_v25 = vmov 0.0  }
  0x58   :  { %2157 = vmatprep.subr.mxu1 %v2849_v52  ;;  %2171 = vmatprep.subr.mxu0 %v3455_v14 }
  0x59   :  { %2158 = vmatpush3.msra.mxu1 %v2875_v58  ;;  %666 = vmatprep.mubr.f32.mxu1 %v3456_v31 }
  0x5a   :  { %2172 = vmatpush3.msra.mxu0 %v3457_v29  ;;  %670 = vmatmul.mubr.f32.vlgmr.msra.gmra.mxu1 %v3458_v35 }
  0x5b   :  { %2173 = vmatprep.subr.mxu0 %v3459_v62  ;;  %2203 = vmatprep.subr.mxu1 %v2451_v3  ;;  %v3464_v3 = vand.u32 4294901760, %v3025_v54 }
  0x5c   :  { %2174 = vmatpush3.msra.mxu0 %v3460_v40  ;;  %2204 = vmatpush3.msra.mxu1 %v2453_v4  ;;  %v3466_v4 = vand.u32 4294901760, %v2698_v6  ;;  %v3483_v6 = vand.u32 4294901760, %v2928_v36  ;;  %v3493_v36 = vld [vmem:[#allocation29_spill] sm:$0xff] }
  0x5d   :  { %2175 = vmatprep.subr.mxu0 %v3461_v45  ;;  %2205 = vmatprep.subr.mxu1 %v2455_v5  ;;  %v3467_v5 = vand.u32 4294901760, %v2725_v55 }
  0x5e   :  { %677 = vmatprep.mubr.f32.mxu1 %v3462_v59  ;;  %2176 = vmatpush3.msra.mxu0 %v3463_v47 }
  0x5f   :  { %2206 = vmatpush3.msra.mxu1 %v2466_v9  ;;  %2177 = vmatprep.subr.mxu0 %v3465_v0  ;;  %v3468_v9 = vand.u32 4294901760, %v2741_v28  ;;  %v3484_v28 = vand.u32 4294901760, %v2945_v41  ;;  %v3494_v41 = vld [vmem:[#allocation18_spill] sm:$0xff] }
  0x60   :  { %681 = vmatmul.mubr.f32.gmra.mxu1 %v3464_v3  ;;  %2207 = vmatprep.subr.mxu1 %v2468_v10  ;;  %v3470_v10 = vand.u32 4294901760, %v2781_v46  ;;  %v3486_v46 = vld [vmem:[#allocation31_spill] sm:$0xff] }
  0x61   :  { %2178 = vmatpush3.msra.mxu0 %v3466_v4  ;;  %2208 = vmatpush3.msra.mxu1 %v2470_v11  ;;  %v3471_v11 = vand.u32 4294901760, %v2793_v60  ;;  %v3479_v60 = vand.u32 4294901760, %v2893_v57  ;;  %v3490_v57 = vand.u32 4294901760, %v3489_v13 }
  0x62   :  { %2179 = vmatprep.subr.mxu0 %v3467_v5  ;;  %2209 = vmatprep.subr.mxu1 %v2482_v15  ;;  %v3472_v15 = vand.u32 4294901760, %v3431_v56 }
  0x63   :  { %2180 = vmatpush3.msra.mxu0 %v3468_v9  ;;  %2210 = vmatpush3.msra.mxu1 %v2484_v16  ;;  %v3473_v16 = vand.u32 4294901760, %v2824_v61  ;;  %v3487_v61 = vand.u32 4294901760, %v3486_v46 }
  0x64   :  { %2181 = vmatprep.subr.mxu0 %v3469_v8  ;;  %2211 = vmatprep.subr.mxu1 %v2486_v17  ;;  %v3474_v17 = vld [vmem:[#allocation24_spill] sm:$0xff] }
  0x65   :  { %2182 = vmatpush3.msra.mxu0 %v3470_v10  ;;  %2212 = vmatpush3.msra.mxu1 %v2508_v22  ;;  %v3475_v34 = vand.u32 4294901760, %v3474_v17  ;;  %v3476_v22 = vand.u32 4294901760, %v2863_v53  ;;  %v3485_v53 = vand.u32 4294901760, %v2955_v43  ;;  %v3495_v43 = vld [vmem:[#allocation35_spill] sm:$0xff] }
  0x66   :  { %2183 = vmatprep.subr.mxu0 %v3471_v11  ;;  %2213 = vmatprep.subr.mxu1 %v2514_v24  ;;  %v3477_v24 = vld [vmem:[#allocation27_spill] sm:$0xff] }
  0x67   :  { %2184 = vmatpush3.msra.mxu0 %v3472_v15  ;;  %2214 = vmatpush3.msra.mxu1 %v3432_v33  ;;  %v3478_v55 = vand.u32 4294901760, %v3477_v24 }
  0x68   :  { %2185 = vmatprep.subr.mxu0 %v3473_v16  ;;  %2215 = vmatprep.subr.mxu1 %v3433_v44 }
  0x69   :  { %2186 = vmatpush3.msra.mxu0 %v3475_v34  ;;  %2216 = vmatpush3.msra.mxu1 %v3434_v7 }
  0x6a   :  { %2187 = vmatprep.subr.mxu0 %v3476_v22  ;;  %2217 = vmatprep.subr.mxu1 %v3435_v39 }
  0x6b   :  { %2188 = vmatpush3.msra.mxu0 %v3478_v55  ;;  %2218 = vmatpush3.msra.mxu1 %v3436_v49 }
  0x6c   :  { %2189 = vmatprep.subr.mxu0 %v3479_v60  ;;  %2219 = vmatprep.subr.mxu1 %v3437_v19  ;;  %v981_v60 = vld [vmem:[%s3310_s3] sm:$0xff]  ;;  %s2410_s3 = smov 32  }
  0x6d   :  { %2190 = vmatpush3.msra.mxu0 %v3481_v48  ;;  %2220 = vmatpush3.msra.mxu1 %v3438_v1  ;;  %v3488_v1 = vld [vmem:[#allocation16_spill] sm:$0xff]  ;;  %v980_v48 = vld [vmem:[%s3309_s2] sm:$0xff]  ;;  %s2409_s2 = smov 16  }
  0x6e   :  { %2191 = vmatprep.subr.mxu0 %v3482_v21  ;;  %2221 = vmatprep.subr.mxu1 %v3439_v2  ;;  %v989_v21 = vsel %vm987_vm1, %v980_v48, 0 }
  0x6f   :  { %2192 = vmatpush3.msra.mxu0 %v3483_v6  ;;  %2222 = vmatpush3.msra.mxu1 %v3440_v20  ;;  %v3492_v20 = vld [vmem:[#allocation17_spill] sm:$0xff]  ;;  %v3213_v6 = vand.u32 4294901760, %v989_v21 }
  0x70   :  { %2193 = vmatprep.subr.mxu0 %v3484_v28  ;;  %2223 = vmatprep.subr.mxu1 %v3441_v27 }
  0x71   :  { %2194 = vmatpush3.msra.mxu0 %v3485_v53  ;;  %2224 = vmatpush3.msra.mxu1 %v3442_v26  ;;  %v3216_v28 = vsub.f32 %v989_v21, %v3213_v6 }
  0x72   :  { %2195 = vmatprep.subr.mxu0 %v3487_v61  ;;  %2225 = vmatprep.subr.mxu1 %v3488_v1 }
  0x73   :  { %2196 = vmatpush3.msra.mxu0 %v3490_v57  ;;  %847 = vmatprep.mubr.f32.mxu0 %v3491_v30  ;;  %v3219_v53 = vand.u32 4294901760, %v3216_v28 }
  0x74   :  { %2226 = vmatpush3.msra.mxu1 %v3492_v20  ;;  %849 = vmatmul.mubr.f32.vlgmr.msra.gmra.mxu0 %v3493_v36 }
  0x75   :  { %2227 = vmatprep.subr.mxu1 %v3494_v41  ;;  %854 = vmatprep.mubr.f32.mxu0 %v3495_v43  ;;  %v1061_v61 = vsub.f32 %v3216_v28, %v3219_v53 }
  0x76   :  { %2228 = vmatpush3.msra.mxu1 %v3447_v12  ;;  %958 = vmatprep.mubr.f32.mxu1 %v3491_v30 }
  0x77   :  { %2229 = vmatprep.subr.mxu1 %v3449_v63  ;;  %2277 = vmatprep.subr.mxu0 %v2405_v25  ;;  %v1062_v30 = vand.u32 4294901760, %v1061_v61 }
  0x78   :  { %2230 = vmatpush3.msra.mxu1 %v3450_v51  ;;  %856 = vmatmul.mubr.f32.gmra.mxu0 %v3009_v32 }
  0x79   :  { %2231 = vmatprep.subr.mxu1 %v3452_v18  ;;  %2281 = vmatprep.mubr.msk.f32.mxu0 %vm2406_vm0, %v2405_v25 }
  0x7a   :  { %2232 = vmatpush3.msra.mxu1 %v2832_v38  ;;  %2373 = vset.pattern.permute.xlu1 %v2408_v42 }
  0x7b   :  { %2233 = vmatprep.subr.mxu1 %v2849_v52  ;;  %2374 = vset.pattern.permute.xlu0 %v2408_v42 }
  0x7c   :  { %2234 = vmatpush3.msra.mxu1 %v2875_v58  ;;  %984 = vperm.xlu1 %2373, %v981_v60  }
  0x7d   :  { %960 = vmatmul.mubr.f32.vlgmr.msra.gmra.mxu1 %v3493_v36  ;;  %2284 = vmatprep.subr.mxu1 %v2405_v25 }
  0x7e   :  { %965 = vmatprep.mubr.f32.mxu1 %v3495_v43 }
  0x81   :  { %967 = vmatmul.mubr.f32.gmra.mxu1 %v3009_v32 }
  0x82   :  { %2288 = vmatprep.mubr.msk.f32.mxu1 %vm2406_vm0, %v2405_v25 }
  0xee   :  { %v2045_v63 = vpop.f32.mrf.mxu0 }
  0xf0   :  { %v2046_v26 = vpop.f32.mrf.mxu0 }
  0xf1   :  { %v2047_v27 = vadd.f32 %v2046_v26, %v2045_v63 }
  0xf5   :  { %v2083_v7 = vpop.f32.mrf.mxu1 }
  0xf7   :  { %v2084_v49 = vpop.f32.mrf.mxu1 }
  0xf8   :  { %v2085_v56 = vadd.f32 %v2084_v49, %v2083_v7 }
  0xfa   :  { %v410_v14 = vadd.f32 %v2085_v56, %v2047_v27 }
 0x10a   :  { %v2048_v39 = vpop.f32.mrf.mxu0 }
 0x10c   :  { %v2049_v44 = vpop.f32.mrf.mxu0 }
 0x10d   :  { %v2050_v18 = vadd.f32 %v2049_v44, %v2048_v39 }
 0x110   :  { %v2121_v19 = vpop.f32.mrf.mxu0 }
 0x111   :  { %v2086_v51 = vpop.f32.mrf.mxu1 }
 0x112   :  { %v2122_v50 = vpop.f32.mrf.mxu0 }
 0x113   :  { %v2087_v38 = vpop.f32.mrf.mxu1  ;;  %v2123_v12 = vadd.f32 %v2122_v50, %v2121_v19 }
 0x114   :  { %v2088_v23 = vadd.f32 %v2087_v38, %v2086_v51 }
 0x115   :  { %v555_v35 = vadd.f32 %v2123_v12, %v410_v14 }
 0x116   :  { %v2124_v54 = vpop.f32.mrf.mxu0  ;;  %v417_v40 = vadd.f32 %v2088_v23, %v2050_v18 }
 0x118   :  { %v2125_v2 = vpop.f32.mrf.mxu0 }
 0x119   :  { %v2126_v45 = vadd.f32 %v2125_v2, %v2124_v54 }
 0x11a   :  { %v2159_v52 = vpop.f32.mrf.mxu1 }
 0x11b   :  { %v564_v9 = vadd.f32 %v2126_v45, %v417_v40 }
 0x11c   :  { %v2160_v58 = vpop.f32.mrf.mxu1 }
 0x11d   :  { %v2161_v29 = vadd.f32 %v2160_v58, %v2159_v52 }
 0x11f   :  { %v672_v0 = vadd.f32 %v2161_v29, %v555_v35 }
 0x120   :  { %v2162_v37 = vpop.f32.mrf.mxu1 }
 0x122   :  { %v2163_v62 = vpop.f32.mrf.mxu1 }
 0x123   :  { %v2164_v4 = vadd.f32 %v2163_v62, %v2162_v37 }
 0x125   :  { %v683_v16 = vadd.f32 %v2164_v4, %v564_v9 }
 0x134   :  { %v2197_v33 = vpop.f32.mrf.mxu0 }
 0x136   :  { %v2198_v32 = vpop.f32.mrf.mxu0 }
 0x137   :  { %v2199_v59 = vadd.f32 %v2198_v32, %v2197_v33  ;;  %v985_v33 = vpop.permute.xlu1 %984 }
 0x138   :  { %v2200_v31 = vpop.f32.mrf.mxu0 }
 0x139   :  { %v851_v8 = vadd.f32 %v2199_v59, %v672_v0 }
 0x13a   :  { %v2201_v47 = vpop.f32.mrf.mxu0 }
 0x13b   :  { %v2202_v10 = vadd.f32 %v2201_v47, %v2200_v31 }
 0x13d   :  { %v2235_v3 = vpop.f32.mrf.mxu1  ;;  %v858_v22 = vadd.f32 %v2202_v10, %v683_v16 }
 0x13f   :  { %v2236_v5 = vpop.f32.mrf.mxu1 }
 0x140   :  { %v2237_v11 = vadd.f32 %v2236_v5, %v2235_v3 }
 0x141   :  { %v2238_v15 = vpop.f32.mrf.mxu1 }
 0x142   :  { %v962_v17 = vadd.f32 %v2237_v11, %v851_v8 }
 0x143   :  { %v2239_v34 = vpop.f32.mrf.mxu1 }
 0x144   :  { %v2240_v24 = vadd.f32 %v2239_v34, %v2238_v15  ;;  %974 = vrot.lane.b32.xlu0 %v962_v17, %s2407_s0  ;;  %v1023_v46 = vand.u32 4294901760, %v962_v17 }
 0x146   :  { %v969_v55 = vadd.f32 %v2240_v24, %v858_v22  ;;  %v1105_v1 = vsub.f32 %v962_v17, %v1023_v46 }
 0x148   :  { %976 = vrot.lane.b32.xlu0 %v969_v55, %s2407_s0  ;;  %v1106_v36 = vand.u32 4294901760, %v1105_v1  ;;  %v1482_v49 = vand.u32 4294901760, %v969_v55 }
 0x14a   :  { %v1107_v26 = vsub.f32 %v1105_v1, %v1106_v36  ;;  %v1564_v51 = vsub.f32 %v969_v55, %v1482_v49 }
 0x14c   :  { %v1108_v44 = vand.u32 4294901760, %v1107_v26  ;;  %v1565_v38 = vand.u32 4294901760, %v1564_v51 }
 0x14e   :  { %v1566_v52 = vsub.f32 %v1564_v51, %v1565_v38 }
 0x150   :  { %v1567_v58 = vand.u32 4294901760, %v1566_v52 }
 0x1b6   :  { %v975_v13 = vpop.permute.xlu0 %974 }
 0x1b7   :  { %v1020_v57 = vand.u32 4294901760, %v975_v13 }
 0x1b9   :  { %v1098_v20 = vsub.f32 %v975_v13, %v1020_v57  ;;  %2278 = vmatpush3.msra.mxu0 %v1020_v57 }
 0x1ba   :  { %2279 = vmatprep.subr.mxu0 %v2405_v25  ;;  %v977_v63 = vpop.permute.xlu0 %976 }
 0x1bb   :  { %v1099_v41 = vand.u32 4294901760, %v1098_v20  ;;  %2280 = vmatpush3.msra.mxu0 %v1023_v46  ;;  %v3228_v7 = vand.u32 4294901760, %v977_v63 }
 0x1bc   :  { %2291 = vmatprep.subr.mxu0 %v2405_v25  ;;  %2282 = vmatmul.mubr.f32.vlgmr.msra.gmra.mxu0 %v1062_v30 }
 0x1bd   :  { %v1100_v43 = vsub.f32 %v1098_v20, %v1099_v41  ;;  %2292 = vmatpush3.msra.mxu0 %v1098_v20  ;;  %2295 = vmatprep.mubr.msk.f32.mxu0 %vm2406_vm0, %v2405_v25  ;;  %v1557_v19 = vsub.f32 %v977_v63, %v3228_v7 }
 0x1be   :  { %2293 = vmatprep.subr.mxu0 %v2405_v25 }
 0x1bf   :  { %v1101_v39 = vand.u32 4294901760, %v1100_v43  ;;  %2294 = vmatpush3.msra.mxu0 %v1105_v1  ;;  %v1558_v50 = vand.u32 4294901760, %v1557_v19 }
 0x1c0   :  { %2305 = vmatprep.subr.mxu0 %v2405_v25  ;;  %2296 = vmatmul.mubr.f32.vlgmr.msra.gmra.mxu0 %v3216_v28 }
 0x1c1   :  { %2285 = vmatpush3.msra.mxu1 %v1101_v39  ;;  %2306 = vmatpush3.msra.mxu0 %v1099_v41  ;;  %v1559_v54 = vsub.f32 %v1557_v19, %v1558_v50 }
 0x1c2   :  { %2286 = vmatprep.subr.mxu1 %v2405_v25  ;;  %2307 = vmatprep.subr.mxu0 %v2405_v25 }
 0x1c3   :  { %2287 = vmatpush3.msra.mxu1 %v1108_v44  ;;  %2308 = vmatpush3.msra.mxu0 %v1106_v36  ;;  %v1560_v2 = vand.u32 4294901760, %v1559_v54 }
 0x1c4   :  { %2289 = vmatmul.mubr.f32.vlgmr.msra.gmra.mxu1 %v3213_v6  ;;  %2298 = vmatprep.subr.mxu1 %v2405_v25 }
 0x1c5   :  { %2309 = vmatprep.mubr.msk.f32.mxu0 %vm2406_vm0, %v2405_v25  ;;  %2319 = vmatprep.subr.mxu0 %v2405_v25 }
 0x1c6   :  { %2299 = vmatpush3.msra.mxu1 %v1020_v57  ;;  %2310 = vmatmul.mubr.f32.vlgmr.msra.gmra.mxu0 %v3213_v6 }
 0x1c7   :  { %2320 = vmatpush3.msra.mxu0 %v3228_v7  ;;  %2300 = vmatprep.subr.mxu1 %v2405_v25 }
 0x1c8   :  { %2321 = vmatprep.subr.mxu0 %v2405_v25  ;;  %2301 = vmatpush3.msra.mxu1 %v1023_v46 }
 0x1c9   :  { %2302 = vmatprep.mubr.msk.f32.mxu1 %vm2406_vm0, %v2405_v25  ;;  %2322 = vmatpush3.msra.mxu0 %v1482_v49 }
 0x1ca   :  { %2303 = vmatmul.mubr.f32.vlgmr.msra.gmra.mxu1 %v3219_v53  ;;  %2312 = vmatprep.subr.mxu1 %v2405_v25 }
 0x1cb   :  { %2323 = vmatprep.mubr.msk.f32.mxu0 %vm2406_vm0, %v2405_v25  ;;  %2333 = vmatprep.subr.mxu0 %v2405_v25 }
 0x1cc   :  { %2313 = vmatpush3.msra.mxu1 %v1020_v57  ;;  %2324 = vmatmul.mubr.f32.vlgmr.msra.gmra.mxu0 %v1062_v30 }
 0x1cd   :  { %2334 = vmatpush3.msra.mxu0 %v1557_v19  ;;  %2314 = vmatprep.subr.mxu1 %v2405_v25 }
 0x1ce   :  { %2335 = vmatprep.subr.mxu0 %v2405_v25  ;;  %2315 = vmatpush3.msra.mxu1 %v1023_v46 }
 0x1cf   :  { %2316 = vmatprep.mubr.msk.f32.mxu1 %vm2406_vm0, %v2405_v25  ;;  %2336 = vmatpush3.msra.mxu0 %v1564_v51 }
 0x1d0   :  { %2317 = vmatmul.mubr.f32.vlgmr.msra.gmra.mxu1 %v3213_v6  ;;  %2326 = vmatprep.subr.mxu1 %v2405_v25 }
 0x1d1   :  { %2337 = vmatprep.mubr.msk.f32.mxu0 %vm2406_vm0, %v2405_v25  ;;  %2347 = vmatprep.subr.mxu0 %v2405_v25 }
 0x1d2   :  { %2327 = vmatpush3.msra.mxu1 %v1560_v2  ;;  %2338 = vmatmul.mubr.f32.vlgmr.msra.gmra.mxu0 %v3216_v28 }
 0x1d3   :  { %2348 = vmatpush3.msra.mxu0 %v1558_v50  ;;  %2328 = vmatprep.subr.mxu1 %v2405_v25 }
 0x1d4   :  { %2349 = vmatprep.subr.mxu0 %v2405_v25  ;;  %2329 = vmatpush3.msra.mxu1 %v1567_v58 }
 0x1d5   :  { %2330 = vmatprep.mubr.msk.f32.mxu1 %vm2406_vm0, %v2405_v25  ;;  %2350 = vmatpush3.msra.mxu0 %v1565_v38 }
 0x1d6   :  { %2331 = vmatmul.mubr.f32.vlgmr.msra.gmra.mxu1 %v3213_v6  ;;  %2340 = vmatprep.subr.mxu1 %v2405_v25 }
 0x1d7   :  { %2341 = vmatpush3.msra.mxu1 %v3228_v7  ;;  %2344 = vmatprep.mubr.msk.f32.mxu1 %vm2406_vm0, %v2405_v25 }
 0x1d8   :  { %2342 = vmatprep.subr.mxu1 %v2405_v25  ;;  %2351 = vmatprep.mubr.msk.f32.mxu0 %vm2406_vm0, %v2405_v25 }
 0x1d9   :  { %2343 = vmatpush3.msra.mxu1 %v1482_v49  ;;  %2352 = vmatmul.mubr.f32.vlgmr.msra.gmra.mxu0 %v3213_v6 }
 0x1da   :  { %2345 = vmatmul.mubr.f32.vlgmr.msra.gmra.mxu1 %v3219_v53  ;;  %2354 = vmatprep.subr.mxu1 %v2405_v25 }
 0x1db   :  { %2355 = vmatpush3.msra.mxu1 %v3228_v7  ;;  %2358 = vmatprep.mubr.msk.f32.mxu1 %vm2406_vm0, %v2405_v25 }
 0x1dc   :  { %2356 = vmatprep.subr.mxu1 %v2405_v25 }
 0x1dd   :  { %2357 = vmatpush3.msra.mxu1 %v1482_v49 }
 0x1de   :  { %2359 = vmatmul.mubr.f32.vlgmr.msra.gmra.mxu1 %v3213_v6 }
 0x27c   :  { %v1064_v56 = vpop.f32.mrf.mxu0 }
 0x27d   :  { %v1065_v37 = vadd.f32 %v1064_v56, %v985_v33  ;;  %v3496_v56 = vld [vmem:[#allocation26_spill] sm:$0xff] }
 0x27e   :  { %v2283_v27 = vpop.f32.mrf.mxu0 }
 0x27f   :  { %v3497_v27 = vld [vmem:[#allocation25_spill] sm:$0xff] }
 0x280   :  { %v1221_v12 = vpop.f32.mrf.mxu0 }
 0x282   :  { %v2297_v32 = vpop.f32.mrf.mxu0 }
 0x284   :  { %v1145_v18 = vpop.f32.mrf.mxu1 }
 0x285   :  { %v1146_v23 = vadd.f32 %v1145_v18, %v1065_v37 }
 0x286   :  { %v2290_v14 = vpop.f32.mrf.mxu1  ;;  %v1373_v31 = vpop.f32.mrf.mxu0 }
 0x287   :  { %v1222_v29 = vadd.f32 %v1221_v12, %v1146_v23 }
 0x288   :  { %v2311_v35 = vpop.f32.mrf.mxu0 }
 0x28a   :  { %v1296_v62 = vpop.f32.mrf.mxu1 }
 0x28b   :  { %v1297_v40 = vadd.f32 %v1296_v62, %v1222_v29 }
 0x28c   :  { %v2304_v45 = vpop.f32.mrf.mxu1  ;;  %v1523_v59 = vpop.f32.mrf.mxu0 }
 0x28d   :  { %v1374_v25 = vadd.f32 %v1373_v31, %v1297_v40  ;;  %v1524_v8 = vadd.f32 %v1523_v59, %v985_v33  ;;  %v3498_v59 = vld [vmem:[#allocation34_spill] sm:$0xff] }
 0x28e   :  { %v2325_v47 = vpop.f32.mrf.mxu0 }
 0x28f   :  { %v3499_v47 = vld [vmem:[#allocation33_spill] sm:$0xff] }
 0x290   :  { %v1446_v3 = vpop.f32.mrf.mxu1 }
 0x291   :  { %v1447_v0 = vadd.f32 %v1446_v3, %v1374_v25 }
 0x292   :  { %v2318_v4 = vpop.f32.mrf.mxu1  ;;  %v1680_v5 = vpop.f32.mrf.mxu0 }
 0x293   :  { %v1909_v9 = vsub.f32 0.0, %v1447_v0 }
 0x294   :  { %v2339_v10 = vpop.f32.mrf.mxu0 }
 0x295   :  { %v1911_v11 = vmul.f32 1.442695, %v1909_v9 }
 0x296   :  { %v1604_v15 = vpop.f32.mrf.mxu1 }
 0x297   :  { %2375 = vpow2.f32 %v1911_v11  ;;  %v1605_v16 = vadd.f32 %v1604_v15, %v1524_v8 }
 0x298   :  { %v2332_v17 = vpop.f32.mrf.mxu1 }
 0x299   :  { %v1681_v34 = vadd.f32 %v1680_v5, %v1605_v16  ;;  %v1832_v22 = vpop.f32.mrf.mxu0 }
 0x29a   :  { %v1755_v24 = vpop.f32.mrf.mxu1 }
 0x29b   :  { %v1756_v55 = vadd.f32 %v1755_v24, %v1681_v34  ;;  %v2353_v60 = vpop.f32.mrf.mxu0 }
 0x29c   :  { %v2346_v42 = vpop.f32.mrf.mxu1 }
 0x29d   :  { %v1833_v48 = vadd.f32 %v1832_v22, %v1756_v55 }
 0x29e   :  { %v1905_v21 = vpop.f32.mrf.mxu1 }
 0x29f   :  { %v1906_v6 = vadd.f32 %v1905_v21, %v1833_v48 }
 0x2a0   :  { %v2360_v28 = vpop.f32.mrf.mxu1 }
 0x2a1   :  { %v1910_v53 = vsub.f32 0.0, %v1906_v6 }
 0x2a3   :  { %v1913_v46 = vmul.f32 1.442695, %v1910_v53 }
 0x2a4   :  { %v2376_v61 = vpop.eup %2375 }
 0x2a5   :  { %v1915_v1 = vadd.f32 1.0, %v2376_v61  ;;  %2377 = vpow2.f32 %v1913_v46 }
 0x2a7   :  { %2379 = vrcp.f32 %v1915_v1 }
 0x2b2   :  { %v2378_v13 = vpop.eup %2377 }
 0x2b3   :  { %v1916_v57 = vadd.f32 1.0, %v2378_v13 }
 0x2b4   :  { %v2380_v30 = vpop.eup %2379 }
 0x2b5   :  { %2381 = vrcp.f32 %v1916_v57  ;;  %1923 = vrot.lane.b32.xlu1 %v2380_v30, %s2409_s2 }
 0x2b9   :  { %1929 = vrot.lane.b32.xlu1 %v2380_v30, %s2410_s3 }
 0x2bd   :  { %1935 = vrot.lane.b32.xlu1 %v2380_v30, %s2411_s12 }
 0x2c1   :  { %1941 = vrot.lane.b32.xlu1 %v2380_v30, %s2412_s13 }
 0x2c2   :  { %v2382_v20 = vpop.eup %2381 }
 0x2c3   :  { %1925 = vrot.lane.b32.xlu0 %v2382_v20, %s2409_s2 }
 0x2c5   :  { %1947 = vrot.lane.b32.xlu1 %v2380_v30, %s2413_s14 }
 0x2c7   :  { %1931 = vrot.lane.b32.xlu0 %v2382_v20, %s2410_s3 }
 0x2c9   :  { %1953 = vrot.lane.b32.xlu1 %v2380_v30, %s2414_s15 }
 0x2cb   :  { %1937 = vrot.lane.b32.xlu0 %v2382_v20, %s2411_s12 }
 0x2cd   :  { %1959 = vrot.lane.b32.xlu1 %v2380_v30, %s2407_s0 }
 0x2cf   :  { %1943 = vrot.lane.b32.xlu0 %v2382_v20, %s2412_s13 }
 0x2d3   :  { %1949 = vrot.lane.b32.xlu0 %v2382_v20, %s2413_s14 }
 0x2d7   :  { %1955 = vrot.lane.b32.xlu0 %v2382_v20, %s2414_s15 }
 0x2db   :  { %1961 = vrot.lane.b32.xlu0 %v2382_v20, %s2407_s0 }
 0x327   :  { %v1924_v36 = vpop.permute.xlu1 %1923 }
 0x328   :  { %v1965_v44 = vsel %vm987_vm1, %v2380_v30, %v1924_v36 }
 0x32b   :  { %v1930_v41 = vpop.permute.xlu1 %1929 }
 0x32c   :  { %v1968_v49 = vsel %vm1967_vm2, %v1965_v44, %v1930_v41 }
 0x32f   :  { %v1936_v43 = vpop.permute.xlu1 %1935 }
 0x330   :  { %v1971_v51 = vsel %vm1970_vm3, %v1968_v49, %v1936_v43 }
 0x333   :  { %v1942_v63 = vpop.permute.xlu1 %1941 }
 0x334   :  { %v1974_v50 = vsel %vm1973_vm4, %v1971_v51, %v1942_v63 }
 0x335   :  { %v1926_v26 = vpop.permute.xlu0 %1925 }
 0x336   :  { %v1966_v18 = vsel %vm987_vm1, %v2382_v20, %v1926_v26 }
 0x337   :  { %v1948_v39 = vpop.permute.xlu1 %1947 }
 0x338   :  { %v1977_v54 = vsel %vm1976_vm5, %v1974_v50, %v1948_v39 }
 0x339   :  { %v1932_v7 = vpop.permute.xlu0 %1931 }
 0x33a   :  { %v1969_v23 = vsel %vm1967_vm2, %v1966_v18, %v1932_v7 }
 0x33b   :  { %v1954_v19 = vpop.permute.xlu1 %1953 }
 0x33c   :  { %v1980_v52 = vsel %vm1979_vm6, %v1977_v54, %v1954_v19 }
 0x33d   :  { %v1938_v38 = vpop.permute.xlu0 %1937 }
 0x33e   :  { %v1972_v31 = vsel %vm1970_vm3, %v1969_v23, %v1938_v38 }
 0x33f   :  { %v1960_v2 = vpop.permute.xlu1 %1959 }
 0x340   :  { %v1983_v58 = vsel %vm1982_vm7, %v1980_v52, %v1960_v2 }
 0x341   :  { %v1987_v33 = vmul.f32 %v1983_v58, %v3496_v56  ;;  %v1993_v12 = vmul.f32 %v1983_v58, %v3497_v27  ;;  %v1944_v37 = vpop.permute.xlu0 %1943 }
 0x342   :  { %v1975_v29 = vsel %vm1973_vm4, %v1972_v31, %v1944_v37 }
 0x343   :  { %1989 = vst [vmem:[#allocation2] sm:$0xff] %v1987_v33  ;;  %1995 = vst [vmem:[#allocation2 + $0x8] sm:$0xff] %v1993_v12 }
 0x345   :  { %v1950_v32 = vpop.permute.xlu0 %1949 }
 0x346   :  { %v1978_v35 = vsel %vm1976_vm5, %v1975_v29, %v1950_v32 }
 0x349   :  { %v1956_v14 = vpop.permute.xlu0 %1955 }
 0x34a   :  { %v1981_v62 = vsel %vm1979_vm6, %v1978_v35, %v1956_v14 }
 0x34d   :  { %v1962_v40 = vpop.permute.xlu0 %1961 }
 0x34e   :  { %v1984_v45 = vsel %vm1982_vm7, %v1981_v62, %v1962_v40 }
 0x34f   :  { %v1988_v25 = vmul.f32 %v1984_v45, %v3498_v59  ;;  %v1994_v3 = vmul.f32 %v1984_v45, %v3499_v47 }
 0x351   :  { %1990 = vst [vmem:[#allocation2 + $0x10] sm:$0xff] %v1988_v25  ;;  %1996 = vst [vmem:[#allocation2 + $0x18] sm:$0xff] %v1994_v3 }
 0x352   :  { %2394 = shalt.err (!%p2391_p4)
}
 0x353   :  { %s2416_s19 = smov 256  }
 0x354   :  { %2008 = dma.vmem_to_hbm [thread:$0]  %s2003_s17, 512, %s3311_s4, [#allocation3], %s2416_s19, %s2416_s19, %s2409_s2  }
 0x355   :  { %2403 = dma.done.wait [#allocation3], 512  }
 0x356   :  { %2404 = vsyncadd [#allocation3], 4294966784 }
 0x357   :  { %2012 = vsyncpa [#allocation3], 1 }

</bundles_post_ra>
